<compile_context>
chip_gen: v5e
topology: v5e:2x2
jax: 0.10.0
libtpu: 0.0.40
codegen_flags: <defaults>
</compile_context>

<pallas_src>
import jax
import jax.numpy as jnp
from jax.experimental import pallas as pl
from jax.experimental.pallas import tpu as pltpu

EPS = 1e-5


def _ln_fn_kernel(x_ref, w_ref, b_ref, o_ref, y_ref):
    # x_ref: (TR, D) row tile; w_ref: (D, TN) weight tile (gamma pre-folded);
    # b_ref: (1, TN) f32 bias tile (beta pre-folded);
    # y_ref: (TR, D) VMEM scratch holding the normalized rows in w.dtype.

    @pl.when(pl.program_id(1) == 0)
    def _compute_layernorm():
        xf = x_ref[...].astype(jnp.float32)
        # One-pass f32 statistics. NOTE: E[x^2] - E[x]^2 can lose precision vs
        # the two-pass form when |mean| >> std; fine for typical activations.
        mean = jnp.mean(xf, axis=-1, keepdims=True)             # (TR, 1)
        mean_sq = jnp.mean(xf * xf, axis=-1, keepdims=True)     # (TR, 1)
        # Clamp: on the masked partial last row block the padding rows hold
        # uninitialized data and could round to a tiny negative variance.
        # Those rows are per-row independent and dropped by the masked store.
        var = jnp.maximum(mean_sq - mean * mean, 0.0)
        inv = jax.lax.rsqrt(var + EPS)                          # (TR, 1)
        y_ref[...] = ((xf - mean) * inv).astype(y_ref.dtype)

    # fn: Linear — matmul in the weight's native dtype (bf16 x bf16 -> f32 is
    # the native MXU path; f32 weights stay f32), f32 accumulation.
    out = jnp.dot(y_ref[...], w_ref[...], preferred_element_type=jnp.float32)
    o_ref[...] = (out + b_ref[...]).astype(o_ref.dtype)


def layer_normalize_fn(x, gamma, beta, w, b, *, tile_rows=512, tile_n=512):
    """x: (B, N, D) -> (B, N, Dout), computing Linear(LayerNorm(x))."""
    B, N, D = x.shape
    Dout = w.shape[1]
    R = B * N
    x2 = x.reshape(R, D)

    # Fold LayerNorm affine into the linear (exact algebra), once per call:
    #   fn(LN(x)) = ((x - mean) * inv) @ (gamma[:,None] * W) + (beta @ W + b)
    wf = w.astype(jnp.float32)
    w_folded = (gamma.astype(jnp.float32)[:, None] * wf).astype(w.dtype)
    b_folded = (beta.astype(jnp.float32) @ wf
                + b.astype(jnp.float32)).reshape(1, Dout).astype(jnp.float32)

    in_item = x2.dtype.itemsize
    out_item = in_item
    w_item = w.dtype.itemsize

    # Dout tile: <= tile_n, multiple of 128 (lane-dense unmasked output
    # stores, full MXU width) unless it covers the whole Dout.
    if Dout <= tile_n:
        tn = Dout
    else:
        tn = max(128, (int(tile_n) // 128) * 128)

    # Row tile: <= tile_rows, multiple of the sublane packing granularity
    # (8 for f32, 16 for bf16) unless it covers all rows.
    pack = 8 if in_item >= 4 else (16 if in_item == 2 else 32)
    tr = min(int(tile_rows), R)
    if tr < R:
        tr = max(pack, (tr // pack) * pack)

    # VMEM budget from the actual device capacity (v5e/v6e: 128 MiB,
    # v7x: 64 MiB per TensorCore) with ~25% headroom.
    try:
        vmem_cap = int(pltpu.get_tpu_info().vmem_capacity_bytes)
    except Exception:
        vmem_cap = 64 << 20  # conservative (v7x) fallback
    budget = (vmem_cap * 3) // 4

    def footprint(tr_, tn_):
        return (2 * tr_ * D * in_item        # x row tile (double buffered)
                + 2 * tr_ * tn_ * out_item   # output tile (double buffered)
                + 2 * D * tn_ * w_item       # weight tile
                + 2 * tn_ * 4                # bias tile
                + tr_ * D * w_item           # normalized-rows scratch
                + (1 << 20))                 # slack

    while footprint(tr, tn) > budget and tr > 2 * pack:
        tr = max(pack, (tr // 2 // pack) * pack)
    while footprint(tr, tn) > budget and tn > 128:
        tn = max(128, (tn // 2 // 128) * 128)

    grid = (pl.cdiv(R, tr), pl.cdiv(Dout, tn))
    vmem_limit = int(min(budget, max(footprint(tr, tn) + (4 << 20), 32 << 20)))

    cost = pl.CostEstimate(
        flops=2 * R * D * Dout + 8 * R * D,
        transcendentals=R,
        bytes_accessed=(R * D * in_item + R * Dout * out_item
                        + D * Dout * w_item + Dout * 4),
    )

    out = pl.pallas_call(
        _ln_fn_kernel,
        out_shape=jax.ShapeDtypeStruct((R, Dout), x.dtype),
        grid_spec=pltpu.PrefetchScalarGridSpec(
            num_scalar_prefetch=0,
            grid=grid,
            in_specs=[
                pl.BlockSpec((tr, D), lambda i, j: (i, 0)),    # x rows
                pl.BlockSpec((D, tn), lambda i, j: (0, j)),    # folded weight
                pl.BlockSpec((1, tn), lambda i, j: (0, j)),    # folded bias
            ],
            out_specs=pl.BlockSpec((tr, tn), lambda i, j: (i, j)),
            scratch_shapes=[pltpu.VMEM((tr, D), w.dtype)],
        ),
        compiler_params=pltpu.CompilerParams(
            dimension_semantics=("parallel", "arbitrary"),
            vmem_limit_bytes=vmem_limit,
        ),
        cost_estimate=cost,
    )(x2, w_folded, b_folded)

    return out.reshape(B, N, Dout)


def _reference(x, gamma, beta, w, b):
    xf = x.astype(jnp.float32)
    mean = jnp.mean(xf, axis=-1, keepdims=True)
    var = jnp.mean((xf - mean) ** 2, axis=-1, keepdims=True)
    y = ((xf - mean) * jax.lax.rsqrt(var + EPS) * gamma.astype(jnp.float32)
         + beta.astype(jnp.float32))
    out = jnp.einsum("bnd,de->bne", y.astype(w.dtype), w,
                     preferred_element_type=jnp.float32)
    out = out + b.astype(jnp.float32)
    return out.astype(x.dtype)


if __name__ == "__main__":
    key = jax.random.PRNGKey(0)

    def make_inputs(B, N, D, dtype):
        kx, kw, kb = jax.random.split(jax.random.fold_in(key, B * N * D), 3)
        x = jax.random.normal(kx, (B, N, D), dtype=jnp.float32).astype(dtype)
        gamma = jnp.ones((D,), dtype=dtype)   # nn.LayerNorm default init
        beta = jnp.zeros((D,), dtype=dtype)
        w = (jax.random.normal(kw, (D, D), dtype=jnp.float32) * 0.05).astype(dtype)
        b = (jax.random.normal(kb, (D,), dtype=jnp.float32) * 0.01).astype(dtype)
        return x, gamma, beta, w, b

    # 1) Small shape consistent with the module (batch=2, seq=8, hidden=32), f32.
    x, g, bt, w, b = make_inputs(2, 8, 32, jnp.float32)
    out = jax.block_until_ready(layer_normalize_fn(x, g, bt, w, b))
    ref = _reference(x, g, bt, w, b)
    assert out.shape == x.shape
    assert jnp.allclose(out, ref, atol=1e-2, rtol=1e-2), "f32 small-case mismatch"

    # 2) R=700 (not divisible by the 512-row tile) and two Dout tiles
    #    (tile_n=128 on Dout=256): exercises the masked partial last row block
    #    plus the j-indexed weight tiling / y-scratch reuse path.
    x, g, bt, w, b = make_inputs(2, 350, 256, jnp.float32)
    out = jax.block_until_ready(layer_normalize_fn(x, g, bt, w, b, tile_n=128))
    ref = _reference(x, g, bt, w, b)
    assert jnp.allclose(out, ref, atol=1e-2, rtol=1e-2), "f32 tail-case mismatch"

    # 3) bf16 fast path (native bf16 x bf16 -> f32 MXU accumulate).
    x, g, bt, w, b = make_inputs(2, 64, 128, jnp.bfloat16)
    out = jax.block_until_ready(layer_normalize_fn(x, g, bt, w, b))
    ref = _reference(x, g, bt, w, b)
    assert jnp.allclose(out.astype(jnp.float32), ref.astype(jnp.float32),
                        atol=3e-2, rtol=3e-2), "bf16 case mismatch"

    print("KERNEL_OK")
</pallas_src>

<mosaic_0001>
module attributes {stable_mosaic.version = 11 : i64} {
  func.func @_ln_fn_kernel(%arg0: i32, %arg1: i32, %arg2: memref<16x32xf32, #tpu.memory_space<vmem>>, %arg3: memref<32x32xf32, #tpu.memory_space<vmem>>, %arg4: memref<1x32xf32, #tpu.memory_space<vmem>>, %arg5: memref<16x32xf32, #tpu.memory_space<vmem>>, %arg6: memref<16x32xf32, #tpu.memory_space<vmem>>) attributes {dimension_semantics = [#tpu.dimension_semantics<parallel>, #tpu.dimension_semantics<arbitrary>], iteration_bounds = array<i64: 1, 1>, scalar_prefetch = 0 : i64, scratch_operands = 1 : i64, tpu.core_type = #tpu.core_type<tc>, window_params = [{transform_indices = @transform_0, window_bounds = array<i64: 16, 32>}, {transform_indices = @transform_1, window_bounds = array<i64: 32, 32>}, {transform_indices = @transform_2, window_bounds = array<i64: 1, 32>}, {transform_indices = @transform_3, window_bounds = array<i64: 16, 32>}]} {
    %c0_i32 = arith.constant 0 : i32
    %0 = arith.cmpi eq, %arg1, %c0_i32 : i32
    %1 = arith.extui %0 : i1 to i32
    %c0_i32_0 = arith.constant 0 : i32
    %2 = arith.cmpi ne, %1, %c0_i32_0 : i32
    scf.if %2 {
      %c0_8 = arith.constant 0 : index
      %c0_9 = arith.constant 0 : index
      %10 = vector.load %arg2[%c0_8, %c0_9] : memref<16x32xf32, #tpu.memory_space<vmem>>, vector<16x32xf32>
      %cst_10 = arith.constant dense<0.000000e+00> : vector<16xf32>
      %11 = vector.multi_reduction <add>, %10, %cst_10 [1] : vector<16x32xf32> to vector<16xf32>
      %12 = vector.shape_cast %11 : vector<16xf32> to vector<16x1xf32>
      %cst_11 = arith.constant 3.200000e+01 : f32
      %13 = vector.broadcast %cst_11 : f32 to vector<16x1xf32>
      %14 = arith.divf %12, %13 : vector<16x1xf32>
      %15 = arith.mulf %10, %10 : vector<16x32xf32>
      %cst_12 = arith.constant dense<0.000000e+00> : vector<16xf32>
      %16 = vector.multi_reduction <add>, %15, %cst_12 [1] : vector<16x32xf32> to vector<16xf32>
      %17 = vector.shape_cast %16 : vector<16xf32> to vector<16x1xf32>
      %cst_13 = arith.constant 3.200000e+01 : f32
      %18 = vector.broadcast %cst_13 : f32 to vector<16x1xf32>
      %19 = arith.divf %17, %18 : vector<16x1xf32>
      %20 = arith.mulf %14, %14 : vector<16x1xf32>
      %21 = arith.subf %19, %20 : vector<16x1xf32>
      %cst_14 = arith.constant 0.000000e+00 : f32
      %22 = vector.broadcast %cst_14 : f32 to vector<16x1xf32>
      %23 = arith.maximumf %21, %22 : vector<16x1xf32>
      %cst_15 = arith.constant 9.99999974E-6 : f32
      %24 = vector.broadcast %cst_15 : f32 to vector<16x1xf32>
      %25 = arith.addf %23, %24 : vector<16x1xf32>
      %26 = math.rsqrt %25 : vector<16x1xf32>
      %27 = vector.broadcast %14 : vector<16x1xf32> to vector<16x32xf32>
      %28 = arith.subf %10, %27 : vector<16x32xf32>
      %29 = vector.broadcast %26 : vector<16x1xf32> to vector<16x32xf32>
      %30 = arith.mulf %28, %29 : vector<16x32xf32>
      %c0_16 = arith.constant 0 : index
      %c0_17 = arith.constant 0 : index
      %31 = vector.load %arg6[%c0_16, %c0_17] : memref<16x32xf32, #tpu.memory_space<vmem>>, vector<16x32xf32>
      tpu.vector_store %arg6[%c0_16, %c0_17], %30 {strides = array<i32>} : memref<16x32xf32, #tpu.memory_space<vmem>>, vector<16x32xf32>,
    } else {
    }
    %c0 = arith.constant 0 : index
    %c0_1 = arith.constant 0 : index
    %3 = vector.load %arg6[%c0, %c0_1] : memref<16x32xf32, #tpu.memory_space<vmem>>, vector<16x32xf32>
    %c0_2 = arith.constant 0 : index
    %c0_3 = arith.constant 0 : index
    %4 = vector.load %arg3[%c0_2, %c0_3] : memref<32x32xf32, #tpu.memory_space<vmem>>, vector<32x32xf32>
    %cst = arith.constant dense<0.000000e+00> : vector<16x32xf32>
    %5 = tpu.matmul %3, %4, %cst {dimension_numbers = #tpu.dot_dimension_numbers<[1], [0], [0], [1], [0, 0, 1, 1], [], []>} : vector<16x32xf32>, vector<32x32xf32>, vector<16x32xf32> -> vector<16x32xf32>
    %c0_4 = arith.constant 0 : index
    %c0_5 = arith.constant 0 : index
    %6 = vector.load %arg4[%c0_4, %c0_5] : memref<1x32xf32, #tpu.memory_space<vmem>>, vector<1x32xf32>
    %7 = vector.broadcast %6 : vector<1x32xf32> to vector<16x32xf32>
    %8 = arith.addf %5, %7 : vector<16x32xf32>
    %c0_6 = arith.constant 0 : index
    %c0_7 = arith.constant 0 : index
    %9 = vector.load %arg5[%c0_6, %c0_7] : memref<16x32xf32, #tpu.memory_space<vmem>>, vector<16x32xf32>
    tpu.vector_store %arg5[%c0_6, %c0_7], %8 {strides = array<i32>} : memref<16x32xf32, #tpu.memory_space<vmem>>, vector<16x32xf32>,
    return
  }
  func.func @transform_0(%arg0: i32, %arg1: i32) -> (i32, i32) {
    %c0_i32 = arith.constant 0 : i32
    %c0_i32_0 = arith.constant 0 : i32
    return %arg0, %c0_i32 : i32, i32
  }
  func.func @transform_1(%arg0: i32, %arg1: i32) -> (i32, i32) {
    %c0_i32 = arith.constant 0 : i32
    %c0_i32_0 = arith.constant 0 : i32
    return %c0_i32, %arg1 : i32, i32
  }
  func.func @transform_2(%arg0: i32, %arg1: i32) -> (i32, i32) {
    %c0_i32 = arith.constant 0 : i32
    %c0_i32_0 = arith.constant 0 : i32
    return %c0_i32, %arg1 : i32, i32
  }
  func.func @transform_3(%arg0: i32, %arg1: i32) -> (i32, i32) {
    %c0_i32 = arith.constant 0 : i32
    return %arg0, %arg1 : i32, i32
  }
}

</mosaic_0001>

<bundles_post_ra>
// kernel: tpu_custom_call.1
= control target key start
LH: loop header
LB: loop body
LE: loop exit
PB: predicated region body
PF: predicated region fallthrough
CT: control target
= control target key end

     0   :  { %8 = vsyncpa [#allocation4], 0  ;;  %s341_s0 = inlined_call_operand.hbm [shape: f32[16,32], index: 0, kind: input, shape index: {}]   ;;  %s342_s1 = inlined_call_operand.hbm [shape: f32[32,32], index: 1, kind: input, shape index: {}]   ;;  %s343_s2 = inlined_call_operand.vmem [shape: f32[1,32], index: 2, kind: input, shape index: {}]   ;;  %s344_s3 = inlined_call_operand.hbm [shape: f32[16,32], index: 3, kind: output, shape index: {}]  }
   0x1   :  { %9 = vsyncpa [#allocation7], 0 }
   0x2   :  { %10 = vsyncpa [#allocation5], 0  ;;  %s15_s14 = sshll.u32 %s341_s0, 4  ;;  %s272_s15 = smov [#allocation3]   ;;  %s16_s14 = int_to_ptr.hbm [resolvable:$true] %s15_s14 }
   0x3   :  { %s17_s16 = sshll.u32 %s272_s15, 4  ;;  %s28_s19 = sshll.u32 %s342_s1, 4  ;;  %s18_s16 = int_to_ptr.vmem [resolvable:$true] %s17_s16  ;;  %s29_s19 = int_to_ptr.hbm [resolvable:$true] %s28_s19 }
   0x4   :  { %s273_s20 = smov 128   ;;  %s274_s21 = smov 8  }
   0x5   :  { %23 = dma.hbm_to_vmem [thread:$0]  %s16_s14, 256, %s18_s16, [#allocation4], %s273_s20, %s273_s20, %s274_s21  }
   0x6   :  { %s275_s22 = smov [#allocation6]  }
   0x7   :  { %s30_s23 = sshll.u32 %s275_s22, 4  ;;  %s31_s23 = int_to_ptr.vmem [resolvable:$true] %s30_s23 }
   0x8   :  { %36 = dma.hbm_to_vmem [thread:$0]  %s29_s19, 512, %s31_s23, [#allocation7], %s273_s20, %s273_s20, %s274_s21  }
   0x9   :  { %266 = dma.done.wait [#allocation4], 256  }
   0xa   :  { %267 = vsyncadd [#allocation4], 4294967040 }
   0xb   :  { %268 = dma.done.wait [#allocation7], 512  }
   0xc   :  { %269 = vsyncadd [#allocation7], 4294966784  ;;  %vm53_vm0 = vcmask 261120   ;;  %v310_v0 = vld [vmem:[#allocation3] sm:$0xff]  ;;  %v316_v3 = vld [vmem:[#allocation3 + $0x8] sm:$0xff]  ;;  %v276_v8 = vmov 32.0  }
   0xd   :  { %v54_v1 = vsel %vm53_vm0, %v310_v0, 0.0  ;;  %v69_v2 = vmul.f32 %v310_v0, %v310_v0  ;;  %v70_v5 = vmul.f32 %v316_v3, %v316_v3  ;;  %v57_v6 = vsel %vm53_vm0, %v316_v3, 0.0  ;;  %v118_v16 = vld [vmem:[#allocation6 + $0x18] sm:$0xff]  ;;  %v117_v19 = vld [vmem:[#allocation6 + $0x10] sm:$0xff]  ;;  %v116_v22 = vld [vmem:[#allocation6 + $0x8] sm:$0xff]  ;;  %s277_s24 = smov [#allocation8]  }
   0xe   :  { %55 = vadd.xlane.f32.xlu0 %v54_v1  ;;  %188 = vrcp.f32 %v276_v8  ;;  %142 = vmatpush.msra.mxu0 %v118_v16  ;;  %v115_v24 = vld [vmem:[#allocation6] sm:$0xff]  ;;  %s159_s25 = sshll.u32 %s277_s24, 4  ;;  %s161_s28 = sshll.u32 %s344_s3, 4  ;;  %s160_s25 = int_to_ptr.vmem [resolvable:$true] %s159_s25  ;;  %s162_s28 = int_to_ptr.hbm [resolvable:$true] %s161_s28 }
   0xf   :  { %v71_v4 = vsel %vm53_vm0, %v69_v2, 0.0  ;;  %v74_v7 = vsel %vm53_vm0, %v70_v5, 0.0  ;;  %177 = vmatpush.msra.mxu1 %v118_v16  ;;  %v187_v55 = vld [vmem:[%s343_s2] ss:$0 sm:$0xff] }
  0x10   :  { %72 = vadd.xlane.f32.xlu1 %v71_v4  ;;  %143 = vmatpush.msra.mxu0 %v117_v19 }
  0x11   :  { %178 = vmatpush.msra.mxu1 %v117_v19 }
  0x12   :  { %144 = vmatpush.msra.mxu0 %v116_v22 }
  0x13   :  { %179 = vmatpush.msra.mxu1 %v116_v22 }
  0x14   :  { %v189_v9 = vpop.eup %188  ;;  %145 = vmatpush.msra.mxu0 %v115_v24 }
  0x15   :  { %v61_v10 = vmul.f32 32.0, %v189_v9  ;;  %vm65_vm1 = vweird.f32 %v189_v9  ;;  %180 = vmatpush.msra.mxu1 %v115_v24 }
  0x16   :  { %58 = vadd.xlane.f32.xlu0 %v57_v6 }
  0x17   :  { %v62_v11 = vsub.f32 1.0, %v61_v10 }
  0x18   :  { %75 = vadd.xlane.f32.xlu1 %v74_v7 }
  0x19   :  { %v63_v12 = vmul.f32 %v189_v9, %v62_v11 }
  0x1b   :  { %v64_v13 = vadd.f32 %v189_v9, %v63_v12 }
  0x1d   :  { %v66_v14 = vsel %vm65_vm1, %v189_v9, %v64_v13 }
  0x81   :  { %v56_v15 = vpop.xlane.xlu0 %55 }
  0x82   :  { %v67_v17 = vmul.f32 %v66_v14, %v56_v15 }
  0x83   :  { %v73_v18 = vpop.xlane.xlu1 %72 }
  0x84   :  { %v79_v20 = vmul.f32 %v67_v17, %v67_v17  ;;  %v77_v21 = vmul.f32 %v73_v18, %v66_v14  ;;  %v107_v42 = vsub.f32 %v310_v0, %v67_v17 }
  0x86   :  { %v81_v23 = vsub.f32 %v77_v21, %v79_v20 }
  0x88   :  { %v83_v25 = vmax.f32 %v81_v23, 0.0 }
  0x89   :  { %v59_v26 = vpop.xlane.xlu0 %58 }
  0x8a   :  { %v85_v27 = vadd.f32 1e-05, %v83_v25  ;;  %v68_v28 = vmul.f32 %v66_v14, %v59_v26 }
  0x8b   :  { %v76_v29 = vpop.xlane.xlu1 %75 }
  0x8c   :  { %190 = vrsqrt.f32 %v85_v27  ;;  %v80_v30 = vmul.f32 %v68_v28, %v68_v28  ;;  %v78_v31 = vmul.f32 %v76_v29, %v66_v14  ;;  %vm93_vm3 = vweird.f32 %v85_v27 }
  0x8d   :  { %v108_v50 = vsub.f32 %v316_v3, %v68_v28 }
  0x8e   :  { %v82_v32 = vsub.f32 %v78_v31, %v80_v30 }
  0x90   :  { %v84_v33 = vmax.f32 %v82_v32, 0.0 }
  0x92   :  { %v191_v34 = vpop.eup %190  ;;  %v86_v36 = vadd.f32 1e-05, %v84_v33 }
  0x93   :  { %v88_v35 = vmul.f32 %v191_v34, %v85_v27  ;;  %vm94_vm2 = vweird.f32 %v191_v34 }
  0x94   :  { %192 = vrsqrt.f32 %v86_v36  ;;  %vm95_vm4 = vmor %vm93_vm3, %vm94_vm2  ;;  %vm103_vm6 = vweird.f32 %v86_v36 }
  0x95   :  { %v89_v37 = vmul.f32 %v191_v34, %v88_v35 }
  0x97   :  { %v90_v38 = vmul.f32 0.5, %v89_v37 }
  0x99   :  { %v91_v39 = vsub.f32 1.5, %v90_v38 }
  0x9a   :  { %v193_v40 = vpop.eup %192 }
  0x9b   :  { %v92_v41 = vmul.f32 %v191_v34, %v91_v39  ;;  %v98_v43 = vmul.f32 %v193_v40, %v86_v36  ;;  %vm104_vm5 = vweird.f32 %v193_v40 }
  0x9c   :  { %vm105_vm7 = vmor %vm103_vm6, %vm104_vm5 }
  0x9d   :  { %v96_v44 = vsel %vm95_vm4, %v191_v34, %v92_v41  ;;  %v99_v46 = vmul.f32 %v193_v40, %v98_v43 }
  0x9e   :  { %v109_v45 = vmul.f32 %v107_v42, %v96_v44 }
  0x9f   :  { %v100_v47 = vmul.f32 0.5, %v99_v46 }
  0xa0   :  { %111 = vst.msk [vmem:[#allocation2] sm:$0xff] %vm53_vm0, %v109_v45 }
  0xa1   :  { %v101_v48 = vsub.f32 1.5, %v100_v47 }
  0xa3   :  { %v102_v49 = vmul.f32 %v193_v40, %v101_v48 }
  0xa5   :  { %v106_v51 = vsel %vm105_vm7, %v193_v40, %v102_v49 }
  0xa6   :  { %v110_v52 = vmul.f32 %v108_v50, %v106_v51 }
  0xa7   :  { %v113_v53 = vld [vmem:[#allocation2] sm:$0xff] }
  0xa8   :  { %175 = vmatmul.msk.f32.vlgmr.msra.gmra.mxu0 %vm53_vm0, %v113_v53  ;;  %112 = vst.msk [vmem:[#allocation2 + $0x8] sm:$0xff] %vm53_vm0, %v110_v52 }
  0xaf   :  { %v114_v54 = vld [vmem:[#allocation2 + $0x8] sm:$0xff] }
  0xb0   :  { %176 = vmatmul.msk.f32.vlgmr.msra.gmra.mxu1 %vm53_vm0, %v114_v54 }
 0x125   :  { %v147_v56 = vpop.f32.mrf.mxu0 }
 0x126   :  { %v148_v57 = vadd.f32 %v187_v55, %v147_v56 }
 0x128   :  { %153 = vst.msk [vmem:[#allocation8] sm:$0xff] %vm53_vm0, %v148_v57 }
 0x12d   :  { %v150_v58 = vpop.f32.mrf.mxu1 }
 0x12e   :  { %v151_v59 = vadd.f32 %v187_v55, %v150_v58 }
 0x130   :  { %154 = vst.msk [vmem:[#allocation8 + $0x8] sm:$0xff] %vm53_vm0, %v151_v59 }
 0x131   :  { %167 = dma.vmem_to_hbm [thread:$0]  %s160_s25, 256, %s162_s28, [#allocation5], %s273_s20, %s273_s20, %s274_s21  }
 0x132   :  { %270 = dma.done.wait [#allocation5], 256  }
 0x133   :  { %271 = vsyncadd [#allocation5], 4294967040 }
 0x134   :  { %172 = vsyncpa [#allocation4], 1 }
 0x135   :  { %173 = vsyncpa [#allocation7], 1 }
 0x136   :  { %174 = vsyncpa [#allocation5], 1 }

</bundles_post_ra>
